<compile_context>
chip_gen: v6e
topology: v6e:2x2x1
jax: 0.10.0
libtpu: 0.0.40
codegen_flags: <defaults>
</compile_context>

<pallas_src>
import functools

import numpy as np

import jax
import jax.numpy as jnp
from jax.experimental import pallas as pl
from jax.experimental.pallas import tpu as pltpu


def _round_up(x, m):
    return ((x + m - 1) // m) * m


def _grouped_softmax_kernel(x_ref, m_ref, mt_ref, o_ref, gmax_ref, *, bounds, eps):
    x = x_ref[...].astype(jnp.float32)          # (TB, C_pad)
    m = m_ref[...].astype(jnp.float32)          # (G, C_pad) one-hot (group -> channels)

    # Per-group max, one column at a time into the (TB, G) VMEM scratch.
    # bounds[g] is a static (lo, hi) channel range when group g is a contiguous
    # run (the common case), (0, 0) for an empty group, or None (masked path).
    # TODO(synk): for very large G switch the non-contiguous fallback to a
    # lax.fori_loop over rows of `m` to bound code size / compile time.
    for g, b in enumerate(bounds):
        if b is None:
            masked = jnp.where(m[g:g + 1, :] > 0.0, x, -jnp.inf)
            col = jnp.max(masked, axis=-1, keepdims=True)            # (TB, 1)
        elif b[1] > b[0]:
            col = jnp.max(x[:, b[0]:b[1]], axis=-1, keepdims=True)   # (TB, 1)
        else:  # empty group: keep a finite value so 0 * gmax stays 0 in the dots
            col = jnp.zeros((x.shape[0], 1), dtype=jnp.float32)
        gmax_ref[:, g:g + 1] = col

    gmax = gmax_ref[...]                                              # (TB, G)
    # Gather each channel's group max (exact one-hot matmul on the MXU).
    exp_max = jnp.dot(gmax, m, preferred_element_type=jnp.float32)    # (TB, C_pad)
    exp_x = jnp.exp(x - exp_max)                                      # (TB, C_pad)
    # Group sums (scatter-add), exact reciprocal on the tiny (TB, G) tensor,
    # gathered back to channel columns and applied as a multiply.
    mt = mt_ref[...].astype(jnp.float32)                              # (C_pad, G)
    gsum = jnp.dot(exp_x, mt, preferred_element_type=jnp.float32)     # (TB, G)
    inv = 1.0 / (gsum + jnp.float32(eps))                             # (TB, G)
    inv_exp = jnp.dot(inv, m, preferred_element_type=jnp.float32)     # (TB, C_pad)
    o_ref[...] = (exp_x * inv_exp).astype(o_ref.dtype)


def softmax_group_norm(x, channel_groups, eps=1e-8, num_groups=None):
    """JAX/Pallas equivalent of SoftmaxGroupNorm.forward."""
    if x.ndim == 3 and x.shape[-1] == 1:
        x = x[..., 0]
    if x.ndim != 2:
        raise ValueError("softmax_group_norm expects (B, C) or (B, C, 1) input")

    B, C = x.shape
    dtype = x.dtype

    # ---- static (host-side numpy) group bookkeeping: no device sync ----
    cg = np.asarray(channel_groups, dtype=np.int64).reshape(-1)
    assert cg.shape[0] == C, "channel_groups must have one entry per channel"
    G = int(num_groups) if num_groups is not None else int(cg.max()) + 1

    bounds = []
    for g in range(G):
        idx = np.flatnonzero(cg == g)
        if idx.size == 0:
            bounds.append((0, 0))                                # empty group
        elif int(idx[-1]) - int(idx[0]) + 1 == idx.size:
            bounds.append((int(idx[0]), int(idx[-1]) + 1))       # contiguous run
        else:
            bounds.append(None)                                  # masked fallback
    bounds = tuple(bounds)

    # Lane-pad channels only when needed (C % 128 == 0 is the common case, and
    # then x goes straight to the kernel with no extra HBM copy at all; the
    # batch dimension is never padded).
    C_pad = C if C % 128 == 0 else max(128, _round_up(C, 128))
    xp = x if C_pad == C else jnp.pad(x, ((0, 0), (0, C_pad - C)))

    # One-hot gather / scatter-sum matrices, built on host, stored bf16 (exact).
    m_np = np.zeros((G, C_pad), dtype=np.float32)
    m_np[cg, np.arange(C)] = 1.0
    m = jnp.asarray(m_np, dtype=jnp.bfloat16)
    mt = jnp.asarray(np.ascontiguousarray(m_np.T), dtype=jnp.bfloat16)

    # ---- generation-aware tile sizing ----
    itemsize = np.dtype(dtype).itemsize
    sub = {4: 8, 2: 16, 1: 32}.get(itemsize, 8)          # dtype-native sublane tile

    try:
        vmem_cap = int(pltpu.get_tpu_info().vmem_capacity_bytes)
    except Exception:
        vmem_cap = 64 * 1024 * 1024                      # assume smallest (v7x)

    if vmem_cap >= 100 * 1024 * 1024:                    # v5e / v6e: 128 MiB VMEM
        tile_budget, vmem_limit, tb_max = 40 << 20, 64 << 20, 1024
    else:                                                # v7x: 64 MiB VMEM per TC
        tile_budget, vmem_limit, tb_max = 20 << 20, 40 << 20, 512

    resident = 2 * G * C_pad * 2                         # m + mt, bf16
    # Single-buffer the constant-index resident inputs only when they are big
    # enough for the second buffer to matter (v7x / large G*C case).
    res_kw = {"pipeline_mode": pl.Buffered(1)} if resident > (1 << 20) else {}
    resident_total = resident if res_kw else 2 * resident

    avail = max(tile_budget - resident_total, 1 << 20)
    # 2x double-buffered in/out tiles in caller dtype + ~6 full-width f32 temps.
    bytes_per_row = C_pad * (4 * itemsize + 6 * 4)
    tb_cap = max(sub, min(tb_max, (avail // bytes_per_row) // sub * sub))

    if B <= sub:
        TB = B                                            # one full-batch block
    else:
        # Aim for >= 4 grid steps so "parallel" can split the batch across
        # v7x's two TensorCores (harmless on single-core v5e/v6e).
        TB = max(sub, min(tb_cap, _round_up(pl.cdiv(B, 4), sub)))
    n_blocks = pl.cdiv(B, TB)                             # partial last block is masked

    kernel = functools.partial(_grouped_softmax_kernel, bounds=bounds, eps=float(eps))

    out = pl.pallas_call(
        kernel,
        out_shape=jax.ShapeDtypeStruct((B, C_pad), dtype),
        grid=(n_blocks,),
        in_specs=[
            pl.BlockSpec((TB, C_pad), lambda i: (i, 0)),             # x batch tile
            pl.BlockSpec((G, C_pad), lambda i: (0, 0), **res_kw),    # gather one-hot (resident)
            pl.BlockSpec((C_pad, G), lambda i: (0, 0), **res_kw),    # scatter-sum one-hot (resident)
        ],
        out_specs=pl.BlockSpec((TB, C_pad), lambda i: (i, 0)),
        scratch_shapes=[pltpu.VMEM((TB, G), jnp.float32)],           # per-group max columns
        compiler_params=pltpu.CompilerParams(
            dimension_semantics=("parallel",),
            vmem_limit_bytes=vmem_limit,
        ),
    )(xp, m, mt)

    if C_pad != C:
        out = out[:, :C]
    return out[..., None]    # matches the PyTorch module's trailing unsqueeze(-1)


def _reference(x, channel_groups, eps=1e-8):
    # Pure-JAX reference mirroring the PyTorch code (segment max / sum).
    if x.ndim == 3 and x.shape[-1] == 1:
        x = x[..., 0]
    cg_np = np.asarray(channel_groups, dtype=np.int32).reshape(-1)
    cg = jnp.asarray(cg_np)
    n_groups = int(cg_np.max()) + 1
    max_values = jax.ops.segment_max(x.T, cg, num_segments=n_groups).T       # (B, G)
    expanded_max = max_values[:, cg_np]                                      # (B, C)
    exp_x = jnp.exp(x - expanded_max)
    sum_exp = jax.ops.segment_sum(exp_x.T, cg, num_segments=n_groups).T      # (B, G)
    expanded_sum = sum_exp[:, cg_np] + eps
    out = exp_x / expanded_sum
    return out[..., None]


if __name__ == "__main__":
    key = jax.random.PRNGKey(0)
    k1, k2 = jax.random.split(key)

    # Test 1: contiguous channel groups, (B, C, 1) input like the PyTorch module.
    B, C = 4, 8
    channel_groups = np.array([0, 0, 0, 1, 1, 2, 2, 2], dtype=np.int32)
    x = jax.random.normal(k1, (B, C, 1), dtype=jnp.float32)

    y = jax.block_until_ready(softmax_group_norm(x, channel_groups, eps=1e-8))
    y_ref = _reference(x, channel_groups, eps=1e-8)
    assert y.shape == x.shape
    assert jnp.allclose(y, y_ref, atol=1e-5, rtol=1e-4), "mismatch (contiguous groups)"

    # Test 2: non-contiguous groups + a batch that does not divide the tile
    # (exercises the masked fallback path and the partial final batch block).
    B2, C2 = 20, 8
    channel_groups2 = np.array([0, 1, 0, 1, 2, 2, 0, 1], dtype=np.int32)
    x2 = jax.random.normal(k2, (B2, C2, 1), dtype=jnp.float32)

    y2 = jax.block_until_ready(softmax_group_norm(x2, channel_groups2, eps=1e-8))
    y2_ref = _reference(x2, channel_groups2, eps=1e-8)
    assert y2.shape == x2.shape
    assert jnp.allclose(y2, y2_ref, atol=1e-5, rtol=1e-4), "mismatch (non-contiguous groups)"

    print("KERNEL_OK")
</pallas_src>

<mosaic_0001>
module attributes {stable_mosaic.version = 11 : i64} {
  func.func @_grouped_softmax_kernel(%arg0: i32, %arg1: memref<4x128xf32, #tpu.memory_space<vmem>>, %arg2: memref<3x128xbf16, #tpu.memory_space<vmem>>, %arg3: memref<128x3xbf16, #tpu.memory_space<vmem>>, %arg4: memref<4x128xf32, #tpu.memory_space<vmem>>, %arg5: memref<4x3xf32, #tpu.memory_space<vmem>>) attributes {dimension_semantics = [#tpu.dimension_semantics<parallel>], iteration_bounds = array<i64: 1>, scalar_prefetch = 0 : i64, scratch_operands = 1 : i64, tpu.core_type = #tpu.core_type<tc>, window_params = [{transform_indices = @transform_0, window_bounds = array<i64: 4, 128>}, {pipeline_mode = #tpu.pipeline_mode<synchronous>, transform_indices = @transform_1, window_bounds = array<i64: 3, 128>}, {pipeline_mode = #tpu.pipeline_mode<synchronous>, transform_indices = @transform_2, window_bounds = array<i64: 128, 3>}, {transform_indices = @transform_3, window_bounds = array<i64: 4, 128>}]} {
    %c0 = arith.constant 0 : index
    %c0_0 = arith.constant 0 : index
    %0 = vector.load %arg1[%c0, %c0_0] : memref<4x128xf32, #tpu.memory_space<vmem>>, vector<4x128xf32>
    %c0_1 = arith.constant 0 : index
    %c0_2 = arith.constant 0 : index
    %1 = vector.load %arg2[%c0_1, %c0_2] : memref<3x128xbf16, #tpu.memory_space<vmem>>, vector<3x128xbf16>
    %2 = arith.extf %1 : vector<3x128xbf16> to vector<3x128xf32>
    %3 = vector.extract_strided_slice %0 {offsets = [0, 0], sizes = [4, 3], strides = [1, 1]} : vector<4x128xf32> to vector<4x3xf32>
    %cst = arith.constant dense<0xFF800000> : vector<4xf32>
    %4 = vector.multi_reduction <maximumf>, %3, %cst [1] : vector<4x3xf32> to vector<4xf32>
    %5 = vector.shape_cast %4 : vector<4xf32> to vector<4x1xf32>
    %c0_3 = arith.constant 0 : index
    %c0_4 = arith.constant 0 : index
    %6 = vector.load %arg5[%c0_3, %c0_4] : memref<4x3xf32, #tpu.memory_space<vmem>>, vector<4x1xf32>
    tpu.vector_store %arg5[%c0_3, %c0_4], %5 {strides = array<i32>} : memref<4x3xf32, #tpu.memory_space<vmem>>, vector<4x1xf32>,
    %7 = vector.extract_strided_slice %0 {offsets = [0, 3], sizes = [4, 2], strides = [1, 1]} : vector<4x128xf32> to vector<4x2xf32>
    %cst_5 = arith.constant dense<0xFF800000> : vector<4xf32>
    %8 = vector.multi_reduction <maximumf>, %7, %cst_5 [1] : vector<4x2xf32> to vector<4xf32>
    %9 = vector.shape_cast %8 : vector<4xf32> to vector<4x1xf32>
    %c0_6 = arith.constant 0 : index
    %c1 = arith.constant 1 : index
    %10 = vector.load %arg5[%c0_6, %c1] : memref<4x3xf32, #tpu.memory_space<vmem>>, vector<4x1xf32>
    tpu.vector_store %arg5[%c0_6, %c1], %9 {strides = array<i32>} : memref<4x3xf32, #tpu.memory_space<vmem>>, vector<4x1xf32>,
    %11 = vector.extract_strided_slice %0 {offsets = [0, 5], sizes = [4, 3], strides = [1, 1]} : vector<4x128xf32> to vector<4x3xf32>
    %cst_7 = arith.constant dense<0xFF800000> : vector<4xf32>
    %12 = vector.multi_reduction <maximumf>, %11, %cst_7 [1] : vector<4x3xf32> to vector<4xf32>
    %13 = vector.shape_cast %12 : vector<4xf32> to vector<4x1xf32>
    %c0_8 = arith.constant 0 : index
    %c2 = arith.constant 2 : index
    %14 = vector.load %arg5[%c0_8, %c2] : memref<4x3xf32, #tpu.memory_space<vmem>>, vector<4x1xf32>
    tpu.vector_store %arg5[%c0_8, %c2], %13 {strides = array<i32>} : memref<4x3xf32, #tpu.memory_space<vmem>>, vector<4x1xf32>,
    %c0_9 = arith.constant 0 : index
    %c0_10 = arith.constant 0 : index
    %15 = vector.load %arg5[%c0_9, %c0_10] : memref<4x3xf32, #tpu.memory_space<vmem>>, vector<4x3xf32>
    %cst_11 = arith.constant dense<0.000000e+00> : vector<4x128xf32>
    %16 = tpu.matmul %15, %2, %cst_11 {dimension_numbers = #tpu.dot_dimension_numbers<[1], [0], [0], [1], [0, 0, 1, 1], [], []>} : vector<4x3xf32>, vector<3x128xf32>, vector<4x128xf32> -> vector<4x128xf32>
    %17 = arith.subf %0, %16 : vector<4x128xf32>
    %18 = math.exp %17 : vector<4x128xf32>
    %c0_12 = arith.constant 0 : index
    %c0_13 = arith.constant 0 : index
    %19 = vector.load %arg3[%c0_12, %c0_13] : memref<128x3xbf16, #tpu.memory_space<vmem>>, vector<128x3xbf16>
    %20 = arith.extf %19 : vector<128x3xbf16> to vector<128x3xf32>
    %cst_14 = arith.constant dense<0.000000e+00> : vector<4x3xf32>
    %21 = tpu.matmul %18, %20, %cst_14 {dimension_numbers = #tpu.dot_dimension_numbers<[1], [0], [0], [1], [0, 0, 1, 1], [], []>} : vector<4x128xf32>, vector<128x3xf32>, vector<4x3xf32> -> vector<4x3xf32>
    %cst_15 = arith.constant 9.99999993E-9 : f32
    %22 = vector.broadcast %cst_15 : f32 to vector<4x3xf32>
    %23 = arith.addf %21, %22 : vector<4x3xf32>
    %cst_16 = arith.constant 1.000000e+00 : f32
    %24 = vector.broadcast %cst_16 : f32 to vector<4x3xf32>
    %25 = arith.divf %24, %23 : vector<4x3xf32>
    %cst_17 = arith.constant dense<0.000000e+00> : vector<4x128xf32>
    %26 = tpu.matmul %25, %2, %cst_17 {dimension_numbers = #tpu.dot_dimension_numbers<[1], [0], [0], [1], [0, 0, 1, 1], [], []>} : vector<4x3xf32>, vector<3x128xf32>, vector<4x128xf32> -> vector<4x128xf32>
    %27 = arith.mulf %18, %26 : vector<4x128xf32>
    %c0_18 = arith.constant 0 : index
    %c0_19 = arith.constant 0 : index
    %28 = vector.load %arg4[%c0_18, %c0_19] : memref<4x128xf32, #tpu.memory_space<vmem>>, vector<4x128xf32>
    tpu.vector_store %arg4[%c0_18, %c0_19], %27 {strides = array<i32>} : memref<4x128xf32, #tpu.memory_space<vmem>>, vector<4x128xf32>,
    return
  }
  func.func @transform_0(%arg0: i32) -> (i32, i32) {
    %c0_i32 = arith.constant 0 : i32
    %c0_i32_0 = arith.constant 0 : i32
    return %arg0, %c0_i32 : i32, i32
  }
  func.func @transform_1(%arg0: i32) -> (i32, i32) {
    %c0_i32 = arith.constant 0 : i32
    %c0_i32_0 = arith.constant 0 : i32
    %c0_i32_1 = arith.constant 0 : i32
    return %c0_i32, %c0_i32_0 : i32, i32
  }
  func.func @transform_2(%arg0: i32) -> (i32, i32) {
    %c0_i32 = arith.constant 0 : i32
    %c0_i32_0 = arith.constant 0 : i32
    %c0_i32_1 = arith.constant 0 : i32
    return %c0_i32, %c0_i32_0 : i32, i32
  }
  func.func @transform_3(%arg0: i32) -> (i32, i32) {
    %c0_i32 = arith.constant 0 : i32
    %c0_i32_0 = arith.constant 0 : i32
    return %arg0, %c0_i32 : i32, i32
  }
}

</mosaic_0001>

<bundles_post_ra>
// kernel: tpu_custom_call.1
= control target key start
LH: loop header
LB: loop body
LE: loop exit
PB: predicated region body
PF: predicated region fallthrough
CT: control target
= control target key end

     0   :  { %vm18_vm0 = vcmask 19456   ;;  %vm24_vm1 = vcmask 35864   ;;  %vm30_vm2 = vcmask 60456   ;;  %s539_s0 = inlined_call_operand.vmem [shape: f32[4,128], index: 0, kind: input, shape index: {}]   ;;  %s540_s1 = inlined_call_operand.vmem [shape: bf16[3,128], index: 1, kind: input, shape index: {}]   ;;  %s541_s2 = inlined_call_operand.vmem [shape: bf16[128,3], index: 2, kind: input, shape index: {}]   ;;  %s542_s3 = inlined_call_operand.hbm [shape: f32[4,128], index: 3, kind: output, shape index: {}]  }
   0x1   :  { %v475_v0 = vld [vmem:[%s539_s0] sm:$0xf] }
   0x2   :  { %v19_v1 = vsel %vm18_vm0, %v475_v0, -inf  ;;  %v31_v2 = vsel %vm30_vm2, %v475_v0, -inf }
   0x3   :  { %8 = vsyncpa [#allocation4], 0  ;;  %20 = vmax.xlane.f32.xlu0 %v19_v1  ;;  %32 = vmax.xlane.f32.xlu1 %v31_v2  ;;  %v25_v3 = vsel %vm24_vm1, %v475_v0, -inf  ;;  %v16_v4 = vld [vmem:[%s540_s1] sm:$0x3]  ;;  %vm41_vm3 = vcmask 1042432  }
   0x4   :  { %v449_v5 = vmov 0.0   ;;  %v17_v6 = vunpack.c.l.bf16 %v16_v4  ;;  %vm450_vm4 = vmmov 0   ;;  %v353_v7 = vld [vmem:[%s541_s2 + $0x38] sm:$0xff]   ;;  %v352_v8 = vld [vmem:[%s541_s2 + $0x30] sm:$0xff]   ;;  %v351_v12 = vld [vmem:[%s541_s2 + $0x28] sm:$0xff]   ;;  %vm22_vm5 = vcmask 3072  }
   0x5   :  { %375 = vmatprep.subr.mxu0 %v449_v5  ;;  %377 = vmatprep.mubr.msk.f32.mxu0 %vm450_vm4, %v449_v5  ;;  %v345_v9 = vunpack.c.l.bf16 %v353_v7  ;;  %v346_v10 = vunpack.c.h.bf16 %v353_v7  ;;  %v342_v11 = vunpack.c.h.bf16 %v352_v8  ;;  %v341_v13 = vunpack.c.l.bf16 %v352_v8  ;;  %v350_v20 = vld [vmem:[%s541_s2 + $0x20] sm:$0xff]   ;;  %v349_v23 = vld [vmem:[%s541_s2 + $0x18] sm:$0xff]   ;;  %v348_v26 = vld [vmem:[%s541_s2 + $0x10] sm:$0xff]  }
   0x6   :  { %380 = vmatprep.subr.mxu1 %v449_v5  ;;  %412 = vmatprep.mubr.msk.f32.mxu1 %vm450_vm4, %v449_v5  ;;  %v338_v14 = vunpack.c.h.bf16 %v351_v12  ;;  %v337_v15 = vunpack.c.l.bf16 %v351_v12  ;;  %vm28_vm6 = vcmask 11272   ;;  %vm34_vm7 = vcmask 19472   ;;  %v347_v27 = vld [vmem:[%s541_s2 + $0x8] sm:$0xff]   ;;  %v316_v31 = vld [vmem:[%s541_s2] sm:$0xff]   ;;  %s451_s2 = smov [#allocation3]  }
   0x7   :  { %26 = vmax.xlane.f32.xlu0 %v25_v3  ;;  %376 = vmatpush3.msk.msra.mxu0 %vm41_vm3, %v17_v6  ;;  %vm37_vm8 = vcmask 23552   ;;  %v334_v21 = vunpack.c.h.bf16 %v350_v20  ;;  %v333_v22 = vunpack.c.l.bf16 %v350_v20  ;;  %v330_v24 = vunpack.c.h.bf16 %v349_v23  ;;  %s303_s30 = sshll.u32 %s451_s2, 4  ;;  %s304_s30 = int_to_ptr.vmem [resolvable:$true] %s303_s30 }
   0x8   :  { %415 = vmatprep.subr.mxu0 %v449_v5  ;;  %381 = vmatpush3.msra.mxu1 %v346_v10  ;;  %v329_v25 = vunpack.c.l.bf16 %v349_v23  ;;  %v326_v28 = vunpack.c.h.bf16 %v348_v26  ;;  %v325_v29 = vunpack.c.l.bf16 %v348_v26  ;;  %v322_v30 = vunpack.c.h.bf16 %v347_v27  ;;  %s427_s4 = scalar_lea.vmem %s304_s30, 64  ;;  %p432_p1 = scmp.lt.s32.totalorder %s304_s30, %s304_s30 }
   0x9   :  { %382 = vmatprep.subr.mxu1 %v449_v5  ;;  %v321_v32 = vunpack.c.l.bf16 %v347_v27  ;;  %v318_v33 = vunpack.c.h.bf16 %v316_v31  ;;  %v317_v34 = vunpack.c.l.bf16 %v316_v31  ;;  %p428_p0 = scmp.ne.s32.totalorder %s304_s30, %s427_s4  ;;  %p433_p2 = scmp.lt.s32.totalorder %s427_s4, %s427_s4 }
   0xa   :  { %383 = vmatpush3.msra.mxu1 %v345_v9 }
   0xb   :  { %384 = vmatprep.subr.mxu1 %v449_v5  ;;  %p434_p3 = por %p433_p2, %p432_p1 }
   0xc   :  { %385 = vmatpush3.msra.mxu1 %v342_v11 }
   0xd   :  { %386 = vmatprep.subr.mxu1 %v449_v5  ;;  %p435_p4 = pnand %p434_p3, %p428_p0 }
   0xe   :  { %387 = vmatpush3.msra.mxu1 %v341_v13 }
   0xf   :  { %388 = vmatprep.subr.mxu1 %v449_v5 }
  0x10   :  { %389 = vmatpush3.msra.mxu1 %v338_v14 }
  0x11   :  { %390 = vmatprep.subr.mxu1 %v449_v5 }
  0x12   :  { %391 = vmatpush3.msra.mxu1 %v337_v15 }
  0x13   :  { %392 = vmatprep.subr.mxu1 %v449_v5 }
  0x14   :  { %393 = vmatpush3.msra.mxu1 %v334_v21 }
  0x15   :  { %394 = vmatprep.subr.mxu1 %v449_v5 }
  0x16   :  { %395 = vmatpush3.msra.mxu1 %v333_v22 }
  0x17   :  { %396 = vmatprep.subr.mxu1 %v449_v5 }
  0x18   :  { %397 = vmatpush3.msra.mxu1 %v330_v24 }
  0x19   :  { %398 = vmatprep.subr.mxu1 %v449_v5 }
  0x1a   :  { %399 = vmatpush3.msra.mxu1 %v329_v25 }
  0x1b   :  { %400 = vmatprep.subr.mxu1 %v449_v5 }
  0x1c   :  { %401 = vmatpush3.msra.mxu1 %v326_v28 }
  0x1d   :  { %402 = vmatprep.subr.mxu1 %v449_v5 }
  0x1e   :  { %403 = vmatpush3.msra.mxu1 %v325_v29 }
  0x1f   :  { %404 = vmatprep.subr.mxu1 %v449_v5 }
  0x20   :  { %405 = vmatpush3.msra.mxu1 %v322_v30 }
  0x21   :  { %406 = vmatprep.subr.mxu1 %v449_v5 }
  0x22   :  { %407 = vmatpush3.msra.mxu1 %v321_v32 }
  0x23   :  { %408 = vmatprep.subr.mxu1 %v449_v5 }
  0x24   :  { %409 = vmatpush3.msra.mxu1 %v318_v33 }
  0x25   :  { %410 = vmatprep.subr.mxu1 %v449_v5 }
  0x26   :  { %411 = vmatpush3.msra.mxu1 %v317_v34 }
  0x8c   :  { %v21_v16 = vpop.xlane.xlu0 %20  ;;  %v33_v17 = vpop.xlane.xlu1 %32 }
  0x8d   :  { %23 = vst.msk [vmem:[#allocation2] sm:$0xf] %vm22_vm5, %v21_v16 }
  0x90   :  { %v27_v18 = vpop.xlane.xlu0 %26 }
  0x91   :  { %29 = vst.msk [vmem:[#allocation2] sm:$0xf] %vm28_vm6, %v27_v18 }
  0x92   :  { %35 = vst.msk [vmem:[#allocation2] sm:$0xf] %vm34_vm7, %v33_v17 }
  0x99   :  { %v36_v19 = vld [vmem:[#allocation2] sm:$0xf] }
  0x9a   :  { %378 = vmatmul.mubr.msk.f32.vlgmr.msra.gmra.mxu0 %vm37_vm8, %v36_v19 }
  0x9b   :  { %416 = vmatpush3.msk.msra.mxu0 %vm41_vm3, %v17_v6  ;;  %417 = vmatprep.mubr.msk.f32.mxu0 %vm450_vm4, %v449_v5 }
 0x15a   :  { %v111_v35 = vpop.f32.mrf.mxu0 }
 0x15b   :  { %v115_v36 = vsub.f32 %v475_v0, %v111_v35 }
 0x15c   :  { %v379_v37 = vpop.f32.mrf.mxu0 }
 0x15d   :  { %v116_v38 = vmul.f32 1.442695, %v115_v36 }
 0x15f   :  { %423 = vpow2.f32 %v116_v38 }
 0x16c   :  { %v424_v39 = vpop.eup %423 }
 0x16d   :  { %413 = vmatmul.mubr.f32.vlgmr.msra.gmra.mxu1 %v424_v39 }
 0x22d   :  { %v216_v40 = vpop.f32.mrf.mxu1 }
 0x22e   :  { %v217_v41 = vadd.f32 1e-08, %v216_v40 }
 0x22f   :  { %v414_v42 = vpop.f32.mrf.mxu1 }
 0x230   :  { %425 = vrcp.f32 %v217_v41 }
 0x23d   :  { %v426_v43 = vpop.eup %425 }
 0x23e   :  { %418 = vmatmul.mubr.msk.f32.vlgmr.msra.gmra.mxu0 %vm37_vm8, %v426_v43 }
 0x2fe   :  { %v291_v44 = vpop.f32.mrf.mxu0 }
 0x2ff   :  { %v295_v45 = vmul.f32 %v424_v39, %v291_v44 }
 0x300   :  { %v419_v46 = vpop.f32.mrf.mxu0 }
 0x301   :  { %296 = vst [vmem:[#allocation3] sm:$0xf] %v295_v45 }
 0x302   :  { %438 = shalt.err (!%p435_p4)
}
 0x303   :  { %306 = dma.vmem_to_hbm [thread:$0]  %s304_s30, 64, %s542_s3, [#allocation4]  }
 0x304   :  { %447 = dma.done.wait [#allocation4], 64  }
 0x305   :  { %448 = vsyncadd [#allocation4], 4294967232 }
 0x306   :  { %310 = vsyncpa [#allocation4], 1 }

</bundles_post_ra>
